<compile_context>
chip_gen: v7x
topology: tpu7x:2x2x1
jax: 0.10.0
libtpu: 0.0.40
codegen_flags: <defaults>
</compile_context>

<pallas_src>
import jax
import jax.numpy as jnp
from jax.experimental import pallas as pl
from jax.experimental.pallas import tpu as pltpu


def _conv1x1_kernel(x_ref, w_ref, b_ref, o_ref):
    # x_ref: (Nb, C, St) VMEM   w_ref: (1, C) VMEM   b_ref: (1,) SMEM
    # o_ref: (Nb, 1, St) VMEM  (lane-dense: St is a multiple of 128)
    w = w_ref[...]                          # (1, C) -- resident across the grid
    b = b_ref[0]                            # scalar from SMEM
    for n in range(x_ref.shape[0]):         # static Nb (<= 8), unrolled
        acc = jnp.dot(w, x_ref[n], preferred_element_type=jnp.float32)  # (1, St)
        o_ref[n] = (acc + b).astype(o_ref.dtype)


def _round_up(x, m):
    return ((x + m - 1) // m) * m


def _vmem_budget():
    """Generation-aware (per-input-buffer byte cap, vmem_limit_bytes)."""
    try:
        phys = pltpu.get_tpu_info().vmem_capacity_bytes
    except Exception:
        phys = None
    if phys is not None and phys >= 100 * 1024 * 1024:
        # v5e / v6e class chips: 128 MiB physical VMEM -> large tiles are free.
        return 24 * 1024 * 1024, 96 * 1024 * 1024
    # v7x (64 MiB physical VMEM) or unknown: ~12 MiB blocks, double-buffered
    # input ~25 MiB, comfortably under a 48 MiB scoped limit.
    return 12 * 1024 * 1024, 48 * 1024 * 1024


def fusenet_forward(x, weight, bias):
    """x: (N, C, D, H, W) float32; weight: (1, C, 1, 1, 1); bias: (1,)."""
    N, C, D, H, W = x.shape
    S = D * H * W
    itemsize = jnp.dtype(x.dtype).itemsize

    # Pure reshapes (NCDHW is already contiguous as (N, C, S)) -- no relayout.
    x_view = x.reshape(N, C, S)
    w_mat = weight.reshape(1, C)
    b_vec = bias.reshape(1)

    max_buf_bytes, vmem_limit = _vmem_budget()

    # Spatial tile: as many 128-lane columns as the per-buffer budget allows.
    bytes_per_lane = C * itemsize
    max_lanes = max(128, ((max_buf_bytes // bytes_per_lane) // 128) * 128)
    s_tile = min(_round_up(S, 128), max_lanes)

    # Small-S regime: fold batch elements into one block so per-step DMA stays
    # multi-MB.  Pick a divisor of N (every block full) and cap the unroll at 8.
    max_nb = max(1, max_buf_bytes // (bytes_per_lane * s_tile))
    nb = 1
    for cand in range(min(N, 8, max_nb), 0, -1):
        if N % cand == 0:
            nb = cand
            break

    n_blocks = N // nb
    s_blocks = pl.cdiv(S, s_tile)
    block_bytes = nb * bytes_per_lane * s_tile

    # v7x megacore: if the whole problem is a single block and the work is
    # non-trivial, split once into two balanced parallel blocks.  Costs at most
    # one extra ~0.35 us grid step on single-TC v5e/v6e.
    if n_blocks * s_blocks < 2 and block_bytes > (2 << 20):
        if nb % 2 == 0:
            nb //= 2
            n_blocks = N // nb
        elif s_tile >= 256:
            s_tile = _round_up(pl.cdiv(S, 2), 128)
            s_blocks = pl.cdiv(S, s_tile)

    grid = (n_blocks, s_blocks)

    out_rows = pl.pallas_call(
        _conv1x1_kernel,
        out_shape=jax.ShapeDtypeStruct((N, 1, S), x.dtype),
        grid=grid,
        in_specs=[
            # Activation block: nb batch elements, all channels, s_tile lanes.
            pl.BlockSpec((nb, C, s_tile), lambda n, j: (n, 0, j)),
            # Weight (1, C): tiny, constant index_map -> stays VMEM-resident.
            pl.BlockSpec((1, C), lambda n, j: (0, 0)),
            # Bias scalar lives in SMEM: no per-step VMEM DMA descriptor.
            pl.BlockSpec(memory_space=pltpu.MemorySpace.SMEM),
        ],
        out_specs=pl.BlockSpec((nb, 1, s_tile), lambda n, j: (n, 0, j)),
        compiler_params=pltpu.CompilerParams(
            dimension_semantics=("parallel", "parallel"),
            vmem_limit_bytes=vmem_limit,
        ),
    )(x_view, w_mat, b_vec)

    # C_out = 1, so this is a free reshape back to NCDHW: (N, 1, D, H, W).
    return out_rows.reshape(N, 1, D, H, W)


if __name__ == "__main__":
    feature_dims = 64 * 3          # 192, as in FuseNet.__init__ default
    N, D, H, W = 2, 4, 8, 8        # small synthetic NCDHW input

    key = jax.random.PRNGKey(0)
    kx, kw, kb = jax.random.split(key, 3)

    x = jax.random.normal(kx, (N, feature_dims, D, H, W), dtype=jnp.float32)
    # Deterministic synthetic parameters matching nn.Conv3d(192, 1, 1, 1, 0).
    weight = jax.random.normal(kw, (1, feature_dims, 1, 1, 1), dtype=jnp.float32) * 0.05
    bias = jax.random.normal(kb, (1,), dtype=jnp.float32) * 0.05

    out = fusenet_forward(x, weight, bias)
    out = jax.block_until_ready(out)

    # Sanity check against the plain-JAX reference of a 1x1x1 Conv3d.
    ref = jnp.einsum("ncdhw,oc->nodhw", x, weight.reshape(1, feature_dims)) + bias.reshape(
        1, 1, 1, 1, 1
    )
    assert out.shape == (N, 1, D, H, W)
    assert jnp.allclose(out, ref, atol=1e-4, rtol=1e-4)

    print("KERNEL_OK")
</pallas_src>

<mosaic_0001>
module attributes {stable_mosaic.version = 11 : i64} {
  func.func @_conv1x1_kernel(%arg0: i32, %arg1: i32, %arg2: memref<2x192x256xf32, #tpu.memory_space<vmem>>, %arg3: memref<1x192xf32, #tpu.memory_space<vmem>>, %arg4: memref<1xf32, #tpu.memory_space<smem>>, %arg5: memref<2x1x256xf32, #tpu.memory_space<vmem>>) attributes {dimension_semantics = [#tpu.dimension_semantics<parallel>, #tpu.dimension_semantics<parallel>], iteration_bounds = array<i64: 1, 1>, scalar_prefetch = 0 : i64, scratch_operands = 0 : i64, tpu.core_type = #tpu.core_type<tc>, window_params = [{transform_indices = @transform_0, window_bounds = array<i64: 2, 192, 256>}, {pipeline_mode = #tpu.pipeline_mode<synchronous>, transform_indices = @transform_1, window_bounds = array<i64: 1, 192>}, {transform_indices = @transform_2, window_bounds = array<i64: 1>}, {transform_indices = @transform_3, window_bounds = array<i64: 2, 1, 256>}]} {
    %c0 = arith.constant 0 : index
    %c0_0 = arith.constant 0 : index
    %0 = vector.load %arg3[%c0, %c0_0] : memref<1x192xf32, #tpu.memory_space<vmem>>, vector<1x192xf32>
    %c0_1 = arith.constant 0 : index
    %1 = memref.load %arg4[%c0_1] : memref<1xf32, #tpu.memory_space<smem>>
    %c0_2 = arith.constant 0 : index
    %c0_3 = arith.constant 0 : index
    %c0_4 = arith.constant 0 : index
    %2 = vector.load %arg2[%c0_2, %c0_3, %c0_4] : memref<2x192x256xf32, #tpu.memory_space<vmem>>, vector<1x192x256xf32>
    %3 = vector.shape_cast %2 : vector<1x192x256xf32> to vector<192x256xf32>
    %cst = arith.constant dense<0.000000e+00> : vector<1x256xf32>
    %4 = tpu.matmul %0, %3, %cst {dimension_numbers = #tpu.dot_dimension_numbers<[1], [0], [0], [1], [0, 0, 1, 1], [], []>} : vector<1x192xf32>, vector<192x256xf32>, vector<1x256xf32> -> vector<1x256xf32>
    %5 = vector.broadcast %1 : f32 to vector<1x256xf32>
    %6 = arith.addf %4, %5 : vector<1x256xf32>
    %c0_5 = arith.constant 0 : index
    %c0_6 = arith.constant 0 : index
    %c0_7 = arith.constant 0 : index
    %7 = vector.load %arg5[%c0_5, %c0_6, %c0_7] : memref<2x1x256xf32, #tpu.memory_space<vmem>>, vector<1x1x256xf32>
    %8 = vector.shape_cast %7 : vector<1x1x256xf32> to vector<1x256xf32>
    %9 = vector.shape_cast %6 : vector<1x256xf32> to vector<1x1x256xf32>
    tpu.vector_store %arg5[%c0_5, %c0_6, %c0_7], %9 {strides = array<i32>} : memref<2x1x256xf32, #tpu.memory_space<vmem>>, vector<1x1x256xf32>,
    %c1 = arith.constant 1 : index
    %c0_8 = arith.constant 0 : index
    %c0_9 = arith.constant 0 : index
    %10 = vector.load %arg2[%c1, %c0_8, %c0_9] : memref<2x192x256xf32, #tpu.memory_space<vmem>>, vector<1x192x256xf32>
    %11 = vector.shape_cast %10 : vector<1x192x256xf32> to vector<192x256xf32>
    %cst_10 = arith.constant dense<0.000000e+00> : vector<1x256xf32>
    %12 = tpu.matmul %0, %11, %cst_10 {dimension_numbers = #tpu.dot_dimension_numbers<[1], [0], [0], [1], [0, 0, 1, 1], [], []>} : vector<1x192xf32>, vector<192x256xf32>, vector<1x256xf32> -> vector<1x256xf32>
    %13 = vector.broadcast %1 : f32 to vector<1x256xf32>
    %14 = arith.addf %12, %13 : vector<1x256xf32>
    %c1_11 = arith.constant 1 : index
    %c0_12 = arith.constant 0 : index
    %c0_13 = arith.constant 0 : index
    %15 = vector.load %arg5[%c1_11, %c0_12, %c0_13] : memref<2x1x256xf32, #tpu.memory_space<vmem>>, vector<1x1x256xf32>
    %16 = vector.shape_cast %15 : vector<1x1x256xf32> to vector<1x256xf32>
    %17 = vector.shape_cast %14 : vector<1x256xf32> to vector<1x1x256xf32>
    tpu.vector_store %arg5[%c1_11, %c0_12, %c0_13], %17 {strides = array<i32>} : memref<2x1x256xf32, #tpu.memory_space<vmem>>, vector<1x1x256xf32>,
    return
  }
  func.func @transform_0(%arg0: i32, %arg1: i32) -> (i32, i32, i32) {
    %c0_i32 = arith.constant 0 : i32
    %c0_i32_0 = arith.constant 0 : i32
    return %arg0, %c0_i32, %arg1 : i32, i32, i32
  }
  func.func @transform_1(%arg0: i32, %arg1: i32) -> (i32, i32) {
    %c0_i32 = arith.constant 0 : i32
    %c0_i32_0 = arith.constant 0 : i32
    %c0_i32_1 = arith.constant 0 : i32
    return %c0_i32, %c0_i32_0 : i32, i32
  }
  func.func @transform_2(%arg0: i32, %arg1: i32) -> i32 {
    %c0_i32 = arith.constant 0 : i32
    %c0_i32_0 = arith.constant 0 : i32
    return %c0_i32 : i32
  }
  func.func @transform_3(%arg0: i32, %arg1: i32) -> (i32, i32, i32) {
    %c0_i32 = arith.constant 0 : i32
    %c0_i32_0 = arith.constant 0 : i32
    return %arg0, %c0_i32, %arg1 : i32, i32, i32
  }
}

</mosaic_0001>

<bundles_post_ra>
// kernel: tpu_custom_call.1
= control target key start
LH: loop header
LB: loop body
LE: loop exit
PB: predicated region body
PF: predicated region fallthrough
CT: control target
= control target key end

     0   :  { %9 = vsyncpa [#allocation4], 0  ;;  %s564_s0 = inlined_call_operand.hbm [shape: f32[2,192,256], index: 0, kind: input, shape index: {}]   ;;  %s565_s1 = inlined_call_operand.vmem [shape: f32[1,192], index: 1, kind: input, shape index: {}]   ;;  %s566_s2 = inlined_call_operand.<no memory space> [shape: f32[1], index: 2, kind: input, shape index: {}]   ;;  %s567_s3 = inlined_call_operand.hbm [shape: f32[2,1,256], index: 3, kind: output, shape index: {}]  }
   0x1   :  { %10 = vsyncpa [#allocation5], 0  ;;  %s498_s12 = smov [#allocation3]   ;;  %s450_s16 = scalar_lea.hbm %s564_s0, 12288 }
   0x2   :  { %s16_s13 = sshll.u32 %s498_s12, 4  ;;  %p451_p0 = scmp.ne.s32.totalorder %s564_s0, %s450_s16  ;;  %s17_s13 = int_to_ptr.vmem [resolvable:$true] %s16_s13 }
   0x3   :  { %p454_p1 = scmp.lt.u32.totalorder %s450_s16, %s564_s0 }
   0x5   :  { %p456_p2 = pnand %p454_p1, %p451_p0 }
   0x7   :  { %459 = shalt.err (!%p456_p2)
}
   0x8   :  { %s460_s21 = scalar_lea.vmem %s17_s13, 12288  ;;  %p465_p4 = scmp.lt.s32.totalorder %s17_s13, %s17_s13 }
   0x9   :  { %p461_p3 = scmp.ne.s32.totalorder %s17_s13, %s460_s21  ;;  %p466_p5 = scmp.lt.s32.totalorder %s460_s21, %s460_s21 }
   0xb   :  { %p467_p6 = por %p466_p5, %p465_p4 }
   0xd   :  { %p468_p7 = pnand %p467_p6, %p461_p3 }
   0xf   :  { %471 = shalt.err (!%p468_p7)
}
  0x10   :  { %s499_s22 = smov 256   ;;  %s500_s23 = smov 16  }
  0x11   :  { %22 = dma.hbm_to_vmem [thread:$0]  %s564_s0, 12288, %s17_s13, [#allocation4], %s499_s22, %s499_s22, %s500_s23  }
  0x12   :  { %494 = dma.done.wait [#allocation4], 12288  }
  0x13   :  { %495 = vsyncadd [#allocation4], 4294955008  ;;  %v33_v0 = vld [vmem:[#allocation3 + $0x8] sm:$0xff]  ;;  %v35_v1 = vld [vmem:[#allocation3 + $0x18] sm:$0xff]  ;;  %vm91_vm0 = vcmask 523264   ;;  %s502_s28 = smov [#allocation6]  }
  0x14   :  { %v190_v2 = vld [vmem:[#allocation3 + $0x188] sm:$0xff]  ;;  %v347_v3 = vpack.c.bf16 %v35_v1, %v33_v0  ;;  %v192_v4 = vld [vmem:[#allocation3 + $0x198] sm:$0xff]  ;;  %v32_v5 = vld [vmem:[#allocation3] sm:$0xff]  ;;  %s333_s29 = sshll.u32 %s502_s28, 4  ;;  %s334_s29 = int_to_ptr.vmem [resolvable:$true] %s333_s29 }
  0x15   :  { %v34_v6 = vld [vmem:[#allocation3 + $0x10] sm:$0xff]  ;;  %v395_v7 = vpack.c.bf16 %v192_v4, %v190_v2  ;;  %v189_v9 = vld [vmem:[#allocation3 + $0x180] sm:$0xff]  ;;  %v37_v11 = vld [vmem:[#allocation3 + $0x28] sm:$0xff]  ;;  %p477_p9 = scmp.lt.s32.totalorder %s334_s29, %s334_s29 }
  0x16   :  { %v349_v8 = vpack.c.bf16 %v34_v6, %v32_v5  ;;  %v191_v10 = vld [vmem:[#allocation3 + $0x190] sm:$0xff]  ;;  %348 = vmatprep.subr.bf16.mxu0 %v347_v3  ;;  %v39_v13 = vld [vmem:[#allocation3 + $0x38] sm:$0xff]  ;;  %v194_v14 = vld [vmem:[#allocation3 + $0x1a8] sm:$0xff] }
  0x17   :  { %v397_v12 = vpack.c.bf16 %v191_v10, %v189_v9  ;;  %v196_v15 = vld [vmem:[#allocation3 + $0x1b8] sm:$0xff]  ;;  %396 = vmatprep.subr.bf16.mxu1 %v395_v7  ;;  %v351_v16 = vpack.c.bf16 %v39_v13, %v37_v11  ;;  %v36_v18 = vld [vmem:[#allocation3 + $0x20] sm:$0xff]  ;;  %v38_v19 = vld [vmem:[#allocation3 + $0x30] sm:$0xff] }
  0x18   :  { %350 = vmatpush1.bf16.msra.mxu0 %v349_v8  ;;  %v399_v17 = vpack.c.bf16 %v196_v15, %v194_v14  ;;  %v193_v20 = vld [vmem:[#allocation3 + $0x1a0] sm:$0xff]  ;;  %v353_v21 = vpack.c.bf16 %v38_v19, %v36_v18  ;;  %v195_v22 = vld [vmem:[#allocation3 + $0x1b0] sm:$0xff]  ;;  %v41_v23 = vld [vmem:[#allocation3 + $0x48] sm:$0xff] }
  0x19   :  { %398 = vmatpush1.bf16.msra.mxu1 %v397_v12  ;;  %v43_v24 = vld [vmem:[#allocation3 + $0x58] sm:$0xff]  ;;  %352 = vmatprep.subr.bf16.mxu0 %v351_v16  ;;  %v401_v25 = vpack.c.bf16 %v195_v22, %v193_v20  ;;  %v198_v27 = vld [vmem:[#allocation3 + $0x1c8] sm:$0xff]  ;;  %v40_v29 = vld [vmem:[#allocation3 + $0x40] sm:$0xff]  ;;  %v82_v16 = vlaneseq }
  0x1a   :  { %400 = vmatprep.subr.bf16.mxu1 %v399_v17  ;;  %v355_v26 = vpack.c.bf16 %v43_v24, %v41_v23  ;;  %v200_v28 = vld [vmem:[#allocation3 + $0x1d8] sm:$0xff]  ;;  %v42_v31 = vld [vmem:[#allocation3 + $0x50] sm:$0xff]  ;;  %v197_v32 = vld [vmem:[#allocation3 + $0x1c0] sm:$0xff] }
  0x1b   :  { %v403_v30 = vpack.c.bf16 %v200_v28, %v198_v27  ;;  %v199_v33 = vld [vmem:[#allocation3 + $0x1d0] sm:$0xff]  ;;  %v357_v34 = vpack.c.bf16 %v42_v31, %v40_v29  ;;  %v45_v35 = vld [vmem:[#allocation3 + $0x68] sm:$0xff]  ;;  %v47_v36 = vld [vmem:[#allocation3 + $0x78] sm:$0xff]  ;;  %v538_v29 = vshrl.u32 %v82_v16, 7  ;;  %vm185_vm1 = vcmp.lt.s32.totalorder %v82_v16, 256 }
  0x1c   :  { %354 = vmatpush1.bf16.msra.mxu0 %v353_v21  ;;  %v202_v37 = vld [vmem:[#allocation3 + $0x1e8] sm:$0xff]  ;;  %v405_v38 = vpack.c.bf16 %v199_v33, %v197_v32  ;;  %v359_v39 = vpack.c.bf16 %v47_v36, %v45_v35  ;;  %v204_v40 = vld [vmem:[#allocation3 + $0x1f8] sm:$0xff]  ;;  %v44_v41 = vld [vmem:[#allocation3 + $0x60] sm:$0xff] }
  0x1d   :  { %402 = vmatpush1.bf16.msra.mxu1 %v401_v25  ;;  %356 = vmatprep.subr.bf16.mxu0 %v355_v26  ;;  %v46_v42 = vld [vmem:[#allocation3 + $0x70] sm:$0xff]  ;;  %v407_v43 = vpack.c.bf16 %v204_v40, %v202_v37  ;;  %v201_v44 = vld [vmem:[#allocation3 + $0x1e0] sm:$0xff]  ;;  %v49_v46 = vld [vmem:[#allocation3 + $0x88] sm:$0xff] }
  0x1e   :  { %404 = vmatprep.subr.bf16.mxu1 %v403_v30  ;;  %v203_v45 = vld [vmem:[#allocation3 + $0x1f0] sm:$0xff]  ;;  %v51_v47 = vld [vmem:[#allocation3 + $0x98] sm:$0xff]  ;;  %v206_v48 = vld [vmem:[#allocation3 + $0x208] sm:$0xff]  ;;  %v361_v50 = vpack.c.bf16 %v46_v42, %v44_v41  ;;  %v88_v42 = vsub.s32 1, %v538_v29 }
  0x1f   :  { %v208_v49 = vld [vmem:[#allocation3 + $0x218] sm:$0xff]  ;;  %v409_v51 = vpack.c.bf16 %v203_v45, %v201_v44  ;;  %v363_v52 = vpack.c.bf16 %v51_v47, %v49_v46  ;;  %v48_v53 = vld [vmem:[#allocation3 + $0x80] sm:$0xff]  ;;  %v50_v54 = vld [vmem:[#allocation3 + $0x90] sm:$0xff] }
  0x20   :  { %358 = vmatpush1.bf16.msra.mxu0 %v357_v34  ;;  %v205_v55 = vld [vmem:[#allocation3 + $0x200] sm:$0xff]  ;;  %v411_v56 = vpack.c.bf16 %v208_v49, %v206_v48  ;;  %v207_v57 = vld [vmem:[#allocation3 + $0x210] sm:$0xff]  ;;  %v53_v58 = vld [vmem:[#allocation3 + $0xa8] sm:$0xff]  ;;  %v365_v62 = vpack.c.bf16 %v50_v54, %v48_v53 }
  0x21   :  { %406 = vmatpush1.bf16.msra.mxu1 %v405_v38  ;;  %360 = vmatprep.subr.bf16.mxu0 %v359_v39  ;;  %v55_v59 = vld [vmem:[#allocation3 + $0xb8] sm:$0xff]  ;;  %v210_v60 = vld [vmem:[#allocation3 + $0x228] sm:$0xff]  ;;  %v413_v63 = vpack.c.bf16 %v207_v57, %v205_v55  ;;  %v52_v1 = vld [vmem:[#allocation3 + $0xa0] sm:$0xff] }
  0x22   :  { %408 = vmatprep.subr.bf16.mxu1 %v407_v43  ;;  %v212_v61 = vld [vmem:[#allocation3 + $0x238] sm:$0xff]  ;;  %v367_v0 = vpack.c.bf16 %v55_v59, %v53_v58  ;;  %v54_v2 = vld [vmem:[#allocation3 + $0xb0] sm:$0xff]  ;;  %v209_v3 = vld [vmem:[#allocation3 + $0x220] sm:$0xff] }
  0x23   :  { %v415_v4 = vpack.c.bf16 %v212_v61, %v210_v60  ;;  %v211_v5 = vld [vmem:[#allocation3 + $0x230] sm:$0xff]  ;;  %v57_v6 = vld [vmem:[#allocation3 + $0xc8] sm:$0xff]  ;;  %v59_v7 = vld [vmem:[#allocation3 + $0xd8] sm:$0xff]  ;;  %v369_v10 = vpack.c.bf16 %v54_v2, %v52_v1 }
  0x24   :  { %362 = vmatpush1.bf16.msra.mxu0 %v361_v50  ;;  %v214_v8 = vld [vmem:[#allocation3 + $0x248] sm:$0xff]  ;;  %v216_v9 = vld [vmem:[#allocation3 + $0x258] sm:$0xff]  ;;  %v417_v11 = vpack.c.bf16 %v211_v5, %v209_v3  ;;  %v371_v12 = vpack.c.bf16 %v59_v7, %v57_v6  ;;  %v56_v13 = vld [vmem:[#allocation3 + $0xc0] sm:$0xff] }
  0x25   :  { %410 = vmatpush1.bf16.msra.mxu1 %v409_v51  ;;  %364 = vmatprep.subr.bf16.mxu0 %v363_v52  ;;  %v58_v14 = vld [vmem:[#allocation3 + $0xd0] sm:$0xff]  ;;  %v213_v15 = vld [vmem:[#allocation3 + $0x240] sm:$0xff]  ;;  %v419_v17 = vpack.c.bf16 %v216_v9, %v214_v8  ;;  %v61_v19 = vld [vmem:[#allocation3 + $0xe8] sm:$0xff] }
  0x26   :  { %412 = vmatprep.subr.bf16.mxu1 %v411_v56  ;;  %v215_v18 = vld [vmem:[#allocation3 + $0x250] sm:$0xff]  ;;  %v63_v20 = vld [vmem:[#allocation3 + $0xf8] sm:$0xff]  ;;  %v218_v21 = vld [vmem:[#allocation3 + $0x268] sm:$0xff]  ;;  %v373_v23 = vpack.c.bf16 %v58_v14, %v56_v13 }
  0x27   :  { %v220_v22 = vld [vmem:[#allocation3 + $0x278] sm:$0xff]  ;;  %v421_v24 = vpack.c.bf16 %v215_v18, %v213_v15  ;;  %v375_v25 = vpack.c.bf16 %v63_v20, %v61_v19  ;;  %v60_v26 = vld [vmem:[#allocation3 + $0xe0] sm:$0xff]  ;;  %v62_v27 = vld [vmem:[#allocation3 + $0xf0] sm:$0xff]  ;;  %v84_v20 = vsub.s32 0, %v538_v29 }
  0x28   :  { %366 = vmatpush1.bf16.msra.mxu0 %v365_v62  ;;  %v217_v28 = vld [vmem:[#allocation3 + $0x260] sm:$0xff]  ;;  %v423_v30 = vpack.c.bf16 %v220_v22, %v218_v21  ;;  %v219_v31 = vld [vmem:[#allocation3 + $0x270] sm:$0xff]  ;;  %v65_v32 = vld [vmem:[#allocation3 + $0x108] sm:$0xff]  ;;  %v377_v36 = vpack.c.bf16 %v62_v27, %v60_v26  ;;  %v80_v26 = vstv %s566_s2  ;;  %s472_s2 = scalar_lea.vmem %s334_s29, 64 }
  0x29   :  { %414 = vmatpush1.bf16.msra.mxu1 %v413_v63  ;;  %368 = vmatprep.subr.bf16.mxu0 %v367_v0  ;;  %v67_v33 = vld [vmem:[#allocation3 + $0x118] sm:$0xff]  ;;  %v222_v34 = vld [vmem:[#allocation3 + $0x288] sm:$0xff]  ;;  %v425_v37 = vpack.c.bf16 %v219_v31, %v217_v28  ;;  %v64_v39 = vld [vmem:[#allocation3 + $0x100] sm:$0xff]  ;;  %p473_p8 = scmp.ne.s32.totalorder %s334_s29, %s472_s2  ;;  %p478_p10 = scmp.lt.s32.totalorder %s472_s2, %s472_s2 }
  0x2a   :  { %416 = vmatprep.subr.bf16.mxu1 %v415_v4  ;;  %v224_v35 = vld [vmem:[#allocation3 + $0x298] sm:$0xff]  ;;  %v379_v38 = vpack.c.bf16 %v67_v33, %v65_v32  ;;  %v66_v40 = vld [vmem:[#allocation3 + $0x110] sm:$0xff]  ;;  %v221_v41 = vld [vmem:[#allocation3 + $0x280] sm:$0xff] }
  0x2b   :  { %v427_v43 = vpack.c.bf16 %v224_v35, %v222_v34  ;;  %v223_v44 = vld [vmem:[#allocation3 + $0x290] sm:$0xff]  ;;  %v69_v45 = vld [vmem:[#allocation3 + $0x128] sm:$0xff]  ;;  %v71_v46 = vld [vmem:[#allocation3 + $0x138] sm:$0xff]  ;;  %v381_v49 = vpack.c.bf16 %v66_v40, %v64_v39  ;;  %p479_p11 = por %p478_p10, %p477_p9 }
  0x2c   :  { %370 = vmatpush1.bf16.msra.mxu0 %v369_v10  ;;  %v226_v47 = vld [vmem:[#allocation3 + $0x2a8] sm:$0xff]  ;;  %v228_v48 = vld [vmem:[#allocation3 + $0x2b8] sm:$0xff]  ;;  %v30_v50 = vld [vmem:[%s565_s1] sm:$0x3]  ;;  %v429_v51 = vpack.c.bf16 %v223_v44, %v221_v41  ;;  %v383_v52 = vpack.c.bf16 %v71_v46, %v69_v45 }
  0x2d   :  { %418 = vmatpush1.bf16.msra.mxu1 %v417_v11  ;;  %372 = vmatprep.subr.bf16.mxu0 %v371_v12  ;;  %v68_v53 = vld [vmem:[#allocation3 + $0x120] sm:$0xff]  ;;  %v70_v54 = vld [vmem:[#allocation3 + $0x130] sm:$0xff]  ;;  %v89_v56 = vrot.slane %v30_v50, %v88_v42  ;;  %v431_v57 = vpack.c.bf16 %v228_v48, %v226_v47  ;;  %v73_v59 = vld [vmem:[#allocation3 + $0x148] sm:$0xff]  ;;  %p480_p12 = pnand %p479_p11, %p473_p8 }
  0x2e   :  { %420 = vmatprep.subr.bf16.mxu1 %v419_v17  ;;  %v225_v55 = vld [vmem:[#allocation3 + $0x2a0] sm:$0xff]  ;;  %v227_v58 = vld [vmem:[#allocation3 + $0x2b0] sm:$0xff]  ;;  %v75_v60 = vld [vmem:[#allocation3 + $0x158] sm:$0xff]  ;;  %v385_v63 = vpack.c.bf16 %v70_v54, %v68_v53 }
  0x2f   :  { %v230_v61 = vld [vmem:[#allocation3 + $0x2c8] sm:$0xff]  ;;  %v232_v62 = vld [vmem:[#allocation3 + $0x2d8] sm:$0xff]  ;;  %345 = vmatprep.mubr.msk.f32.mxu0 %vm91_vm0, %v89_v56  ;;  %346 = vmatprep.mubr.msk.f32.mxu1 %vm91_vm0, %v89_v56  ;;  %v433_v0 = vpack.c.bf16 %v227_v58, %v225_v55  ;;  %v387_v1 = vpack.c.bf16 %v75_v60, %v73_v59  ;;  %v72_v2 = vld [vmem:[#allocation3 + $0x140] sm:$0xff] }
  0x30   :  { %374 = vmatpush1.bf16.msra.mxu0 %v373_v23  ;;  %v74_v3 = vld [vmem:[#allocation3 + $0x150] sm:$0xff]  ;;  %v229_v4 = vld [vmem:[#allocation3 + $0x2c0] sm:$0xff]  ;;  %v435_v5 = vpack.c.bf16 %v232_v62, %v230_v61  ;;  %v77_v7 = vld [vmem:[#allocation3 + $0x168] sm:$0xff]  ;;  %v85_v23 = vrot.slane %v30_v50, %v84_v20 }
  0x31   :  { %422 = vmatpush1.bf16.msra.mxu1 %v421_v24  ;;  %376 = vmatprep.subr.bf16.mxu0 %v375_v25  ;;  %v231_v6 = vld [vmem:[#allocation3 + $0x2d0] sm:$0xff]  ;;  %v79_v8 = vld [vmem:[#allocation3 + $0x178] sm:$0xff]  ;;  %v234_v9 = vld [vmem:[#allocation3 + $0x2e8] sm:$0xff]  ;;  %v389_v11 = vpack.c.bf16 %v74_v3, %v72_v2  ;;  %v501_v24 = vmov 1966171168  }
  0x32   :  { %424 = vmatprep.subr.bf16.mxu1 %v423_v30  ;;  %v236_v10 = vld [vmem:[#allocation3 + $0x2f8] sm:$0xff]  ;;  %v437_v12 = vpack.c.bf16 %v231_v6, %v229_v4  ;;  %v391_v13 = vpack.c.bf16 %v79_v8, %v77_v7  ;;  %v76_v14 = vld [vmem:[#allocation3 + $0x160] sm:$0xff]  ;;  %v78_v15 = vld [vmem:[#allocation3 + $0x170] sm:$0xff]  ;;  %v169_v25 = vunpack.c.l.s4 %v501_v24 }
  0x33   :  { %v439_v17 = vpack.c.bf16 %v236_v10, %v234_v9  ;;  %v233_v18 = vld [vmem:[#allocation3 + $0x2e0] sm:$0xff]  ;;  %v235_v19 = vld [vmem:[#allocation3 + $0x2f0] sm:$0xff]  ;;  %v393_v21 = vpack.c.bf16 %v78_v15, %v76_v14 }
  0x34   :  { %378 = vmatpush1.bf16.msra.mxu0 %v377_v36  ;;  %v441_v22 = vpack.c.bf16 %v235_v19, %v233_v18  ;;  %v170_v27 = vunpack.c.0.s8 %v169_v25 }
  0x35   :  { %426 = vmatpush1.bf16.msra.mxu1 %v425_v37  ;;  %380 = vmatprep.subr.bf16.mxu0 %v379_v38 }
  0x36   :  { %428 = vmatprep.subr.bf16.mxu1 %v427_v43  ;;  %v173_v35 = vsub.s32 %v170_v27, %v538_v29 }
  0x38   :  { %382 = vmatpush1.bf16.msra.mxu0 %v381_v49 }
  0x39   :  { %430 = vmatpush1.bf16.msra.mxu1 %v429_v51  ;;  %384 = vmatprep.subr.bf16.mxu0 %v383_v52 }
  0x3a   :  { %432 = vmatprep.subr.bf16.mxu1 %v431_v57 }
  0x3c   :  { %386 = vmatpush1.bf16.msra.mxu0 %v385_v63 }
  0x3d   :  { %434 = vmatpush1.bf16.msra.mxu1 %v433_v0  ;;  %388 = vmatprep.subr.bf16.mxu0 %v387_v1 }
  0x3e   :  { %436 = vmatprep.subr.bf16.mxu1 %v435_v5 }
  0x40   :  { %390 = vmatpush1.bf16.msra.mxu0 %v389_v11 }
  0x41   :  { %438 = vmatpush1.bf16.msra.mxu1 %v437_v12  ;;  %392 = vmatprep.subr.bf16.mxu0 %v391_v13 }
  0x42   :  { %440 = vmatprep.subr.bf16.mxu1 %v439_v17 }
  0x44   :  { %394 = vmatpush1.bf16.msra.mxu0 %v393_v21 }
  0x45   :  { %442 = vmatpush1.bf16.msra.mxu1 %v441_v22 }
  0x47   :  { %159 = vmatmul.mubr.f32.vlgmr.msra.gmra.mrb[0].mxu0 %v85_v23 }
  0x48   :  { %302 = vmatmul.mubr.f32.vlgmr.msra.gmra.mrb[0].mxu1 %v85_v23 }
 0x11a   :  { %v160_v28 = vpop.f32.mrb[0].mxu0 }
 0x11b   :  { %v161_v30 = vadd.f32 %v160_v28, %v80_v26  ;;  %v303_v31 = vpop.f32.mrb[0].mxu1  ;;  %v162_v32 = vpop.f32.mrb[1].mxu0 }
 0x11c   :  { %v304_v33 = vadd.f32 %v303_v31, %v80_v26  ;;  %v163_v34 = vadd.f32 %v162_v32, %v80_v26  ;;  %v305_v36 = vpop.f32.mrb[1].mxu1 }
 0x11d   :  { %v306_v37 = vadd.f32 %v305_v36, %v80_v26 }
 0x11e   :  { %v167_v38 = vcombine.low %v161_v30, %v163_v34 }
 0x11f   :  { %v310_v39 = vcombine.low %v304_v33, %v306_v37 }
 0x120   :  { %v174_v40 = vrot.slane %v167_v38, %v173_v35 }
 0x121   :  { %v317_v41 = vrot.slane %v310_v39, %v173_v35 }
 0x122   :  { %v181_v42 = vrot.slane %v174_v40, %v173_v35 }
 0x123   :  { %v324_v43 = vrot.slane %v317_v41, %v173_v35 }
 0x124   :  { %187 = vst.msk [vmem:[#allocation6] sm:$0x3] %vm185_vm1, %v181_v42 }
 0x125   :  { %327 = vst.msk [vmem:[#allocation6 + $0x2] sm:$0x3] %vm185_vm1, %v324_v43 }
 0x126   :  { %483 = shalt.err (!%p480_p12)
}
 0x127   :  { %s484_s5 = scalar_lea.hbm %s567_s3, 64 }
 0x128   :  { %p485_p13 = scmp.ne.s32.totalorder %s567_s3, %s484_s5  ;;  %p488_p0 = scmp.lt.u32.totalorder %s484_s5, %s567_s3 }
 0x12a   :  { %p490_p1 = pnand %p488_p0, %p485_p13 }
 0x12c   :  { %493 = shalt.err (!%p490_p1)
}
 0x12d   :  { %s503_s10 = smov 32   ;;  %s504_s11 = smov 2  }
 0x12e   :  { %339 = dma.vmem_to_hbm [thread:$0]  %s334_s29, 64, %s567_s3, [#allocation5], %s503_s10, %s503_s10, %s504_s11  }
 0x12f   :  { %496 = dma.done.wait [#allocation5], 64  }
 0x130   :  { %497 = vsyncadd [#allocation5], 4294967232 }
 0x131   :  { %343 = vsyncpa [#allocation4], 1 }
 0x132   :  { %344 = vsyncpa [#allocation5], 1 }

</bundles_post_ra>
